<compile_context>
chip_gen: v5e
topology: v5e:2x2
jax: 0.10.0
libtpu: 0.0.40
codegen_flags: <defaults>
</compile_context>

<pallas_src>
import functools

import jax
import jax.numpy as jnp
from jax.experimental import pallas as pl
from jax.experimental.pallas import tpu as pltpu


def _linear_kernel(x_ref, w_ref, b_ref, o_ref, *, compute_dtype):
    # x_ref: (TM, K)  w_ref: (K, N)  b_ref: (1, N)  o_ref: (TM, N)
    x = x_ref[...]
    w = w_ref[...]
    if compute_dtype is not None:
        # Optional reduced-precision MXU operands; accumulation stays f32.
        x = x.astype(compute_dtype)
        w = w.astype(compute_dtype)
    acc = jnp.dot(x, w, preferred_element_type=jnp.float32)
    o_ref[...] = (acc + b_ref[...].astype(jnp.float32)).astype(o_ref.dtype)


def _device_kind():
    try:
        return jax.devices()[0].device_kind.lower()
    except Exception:  # pragma: no cover - CPU interpret fallback etc.
        return ""


def _default_max_tm():
    kind = _device_kind()
    if "v5" in kind:
        # v5e scoped-VMEM default is 16 MiB; keep double-buffered x+y ~8 MiB.
        return 4096
    # v6e (32/128 MiB) and v7x (32/64 MiB) comfortably hold tm=8192 (~16 MiB).
    return 8192


def _num_tensorcores_per_chip():
    # v7x exposes 2 TensorCores per chip; split "parallel" grid axes across them.
    kind = _device_kind()
    return 2 if "v7" in kind else 1


def _round_up(x, m):
    return ((x + m - 1) // m) * m


def actor_front2_forward(x, weights, bias, *, max_tm=None, compute_dtype=None):
    """y = x @ weights + bias, matching torch.matmul(x, W) + b semantics.

    max_tm: maximum batch-rows per grid step (multiple of 8).  Defaults to a
            per-generation value (4096 on v5e, 8192 on v6e/v7x).
    compute_dtype: optional MXU operand dtype (f32 accumulate).  For real
            bandwidth wins pass bf16 arrays end-to-end instead.
    """
    M, K = x.shape
    K2, N = weights.shape
    assert K == K2, "obs_dim mismatch between x and weights"

    if max_tm is None:
        max_tm = _default_max_tm()
    assert max_tm % 8 == 0

    b2d = bias.reshape(1, N)  # 2-D bias maps cleanly onto (sublane, lane)

    n_cores = _num_tensorcores_per_chip()
    if M <= max_tm:
        if n_cores > 1 and M >= 256:
            # v7x: force >=2 parallel grid steps so both TensorCores are used.
            tm = min(max_tm, _round_up(pl.cdiv(M, n_cores), 8))
        else:
            # Single block == full array (block_shape equal to the array dim
            # satisfies the (8,128) rule even for ragged M).
            tm = M
    else:
        tm = max_tm

    grid = (pl.cdiv(M, tm),)
    # Only request megacore sharding when there is actually work to split.
    semantics = ("parallel",) if grid[0] > 1 else ("arbitrary",)

    kernel = functools.partial(_linear_kernel, compute_dtype=compute_dtype)

    # No jnp.pad / trailing slice: Pallas pad-reads the last partial x block
    # and masks writes to the last partial output block.  Safe because the
    # computation is row-independent (no cross-row reduction fused here).
    return pl.pallas_call(
        kernel,
        out_shape=jax.ShapeDtypeStruct((M, N), x.dtype),
        grid=grid,
        in_specs=[
            pl.BlockSpec((tm, K), lambda i: (i, 0)),   # x tile over batch
            pl.BlockSpec((K, N), lambda i: (0, 0)),    # full weight matrix (resident)
            pl.BlockSpec((1, N), lambda i: (0, 0)),    # bias row (resident)
        ],
        out_specs=pl.BlockSpec((tm, N), lambda i: (i, 0)),
        compiler_params=pltpu.CompilerParams(dimension_semantics=semantics),
    )(x, weights, b2d)


if __name__ == "__main__":
    # Small shapes consistent with the module:
    #   obs_dim = 64, hidden_sizes = 128, batch = 128
    batch, obs_dim, hidden_sizes = 128, 64, 128

    key = jax.random.PRNGKey(0)
    kx, kw = jax.random.split(key)

    # Deterministic parameter init mirroring the PyTorch module:
    #   weights ~ Normal(0, 1), bias = 0.1
    weights = jax.random.normal(kw, (obs_dim, hidden_sizes), dtype=jnp.float32)
    bias = jnp.full((hidden_sizes,), 0.1, dtype=jnp.float32)

    x = jax.random.normal(kx, (batch, obs_dim), dtype=jnp.float32)

    # Default path: single grid step, whole problem resident in VMEM.
    y = actor_front2_forward(x, weights, bias)
    y = jax.block_until_ready(y)

    y_ref = x @ weights + bias
    assert y.shape == (batch, hidden_sizes)
    assert jnp.allclose(y, y_ref, atol=1e-5, rtol=1e-5), "mismatch vs reference"

    # Exercise the multi-step + ragged-batch path (partial last block, no pad).
    batch2 = 100  # not a multiple of the tile
    x2 = jax.random.normal(jax.random.PRNGKey(1), (batch2, obs_dim), dtype=jnp.float32)
    y2 = actor_front2_forward(x2, weights, bias, max_tm=64)
    y2 = jax.block_until_ready(y2)
    y2_ref = x2 @ weights + bias
    assert y2.shape == (batch2, hidden_sizes)
    assert jnp.allclose(y2, y2_ref, atol=1e-5, rtol=1e-5), "mismatch vs reference (tiled)"

    print("KERNEL_OK")
</pallas_src>

<mosaic_0001>
module attributes {stable_mosaic.version = 11 : i64} {
  func.func @_linear_kernel(%arg0: i32, %arg1: memref<128x64xf32, #tpu.memory_space<vmem>>, %arg2: memref<64x128xf32, #tpu.memory_space<vmem>>, %arg3: memref<1x128xf32, #tpu.memory_space<vmem>>, %arg4: memref<128x128xf32, #tpu.memory_space<vmem>>) attributes {dimension_semantics = [#tpu.dimension_semantics<arbitrary>], iteration_bounds = array<i64: 1>, scalar_prefetch = 0 : i64, scratch_operands = 0 : i64, tpu.core_type = #tpu.core_type<tc>, window_params = [{transform_indices = @transform_0, window_bounds = array<i64: 128, 64>}, {pipeline_mode = #tpu.pipeline_mode<synchronous>, transform_indices = @transform_1, window_bounds = array<i64: 64, 128>}, {pipeline_mode = #tpu.pipeline_mode<synchronous>, transform_indices = @transform_2, window_bounds = array<i64: 1, 128>}, {transform_indices = @transform_3, window_bounds = array<i64: 128, 128>}]} {
    %c0 = arith.constant 0 : index
    %c0_0 = arith.constant 0 : index
    %0 = vector.load %arg1[%c0, %c0_0] : memref<128x64xf32, #tpu.memory_space<vmem>>, vector<128x64xf32>
    %c0_1 = arith.constant 0 : index
    %c0_2 = arith.constant 0 : index
    %1 = vector.load %arg2[%c0_1, %c0_2] : memref<64x128xf32, #tpu.memory_space<vmem>>, vector<64x128xf32>
    %cst = arith.constant dense<0.000000e+00> : vector<128x128xf32>
    %2 = tpu.matmul %0, %1, %cst {dimension_numbers = #tpu.dot_dimension_numbers<[1], [0], [0], [1], [0, 0, 1, 1], [], []>} : vector<128x64xf32>, vector<64x128xf32>, vector<128x128xf32> -> vector<128x128xf32>
    %c0_3 = arith.constant 0 : index
    %c0_4 = arith.constant 0 : index
    %3 = vector.load %arg3[%c0_3, %c0_4] : memref<1x128xf32, #tpu.memory_space<vmem>>, vector<1x128xf32>
    %4 = vector.broadcast %3 : vector<1x128xf32> to vector<128x128xf32>
    %5 = arith.addf %2, %4 : vector<128x128xf32>
    %c0_5 = arith.constant 0 : index
    %c0_6 = arith.constant 0 : index
    %6 = vector.load %arg4[%c0_5, %c0_6] : memref<128x128xf32, #tpu.memory_space<vmem>>, vector<128x128xf32>
    tpu.vector_store %arg4[%c0_5, %c0_6], %5 {strides = array<i32>} : memref<128x128xf32, #tpu.memory_space<vmem>>, vector<128x128xf32>,
    return
  }
  func.func @transform_0(%arg0: i32) -> (i32, i32) {
    %c0_i32 = arith.constant 0 : i32
    %c0_i32_0 = arith.constant 0 : i32
    return %arg0, %c0_i32 : i32, i32
  }
  func.func @transform_1(%arg0: i32) -> (i32, i32) {
    %c0_i32 = arith.constant 0 : i32
    %c0_i32_0 = arith.constant 0 : i32
    %c0_i32_1 = arith.constant 0 : i32
    return %c0_i32, %c0_i32_0 : i32, i32
  }
  func.func @transform_2(%arg0: i32) -> (i32, i32) {
    %c0_i32 = arith.constant 0 : i32
    %c0_i32_0 = arith.constant 0 : i32
    %c0_i32_1 = arith.constant 0 : i32
    return %c0_i32, %c0_i32_0 : i32, i32
  }
  func.func @transform_3(%arg0: i32) -> (i32, i32) {
    %c0_i32 = arith.constant 0 : i32
    %c0_i32_0 = arith.constant 0 : i32
    return %arg0, %c0_i32 : i32, i32
  }
}

</mosaic_0001>

<bundles_post_ra>
// kernel: tpu_custom_call.1
= control target key start
LH: loop header
LB: loop body
LE: loop exit
PB: predicated region body
PF: predicated region fallthrough
CT: control target
= control target key end

     0   :  { %s378_s0 = inlined_call_operand.vmem [shape: f32[128,64], index: 0, kind: input, shape index: {}]   ;;  %s379_s1 = inlined_call_operand.vmem [shape: f32[64,128], index: 1, kind: input, shape index: {}]   ;;  %s380_s2 = inlined_call_operand.vmem [shape: f32[1,128], index: 2, kind: input, shape index: {}]   ;;  %s381_s3 = inlined_call_operand.hbm [shape: f32[128,128], index: 3, kind: output, shape index: {}]  }
   0x1   :  { %v38_v0 = vld [vmem:[%s379_s1 + $0x38] sm:$0xff]  ;;  %v37_v1 = vld [vmem:[%s379_s1 + $0x30] sm:$0xff]  ;;  %v36_v2 = vld [vmem:[%s379_s1 + $0x28] sm:$0xff] }
   0x2   :  { %208 = vmatpush.msra.mxu2 %v38_v0  ;;  %209 = vmatpush.msra.mxu3 %v38_v0  ;;  %v35_v3 = vld [vmem:[%s379_s1 + $0x20] sm:$0xff]  ;;  %v34_v4 = vld [vmem:[%s379_s1 + $0x18] sm:$0xff] }
   0x3   :  { %100 = vmatpush.msra.mxu0 %v38_v0  ;;  %207 = vmatpush.msra.mxu1 %v38_v0 }
   0x4   :  { %211 = vmatpush.msra.mxu2 %v37_v1  ;;  %212 = vmatpush.msra.mxu3 %v37_v1 }
   0x5   :  { %101 = vmatpush.msra.mxu0 %v37_v1  ;;  %210 = vmatpush.msra.mxu1 %v37_v1 }
   0x6   :  { %214 = vmatpush.msra.mxu2 %v36_v2  ;;  %215 = vmatpush.msra.mxu3 %v36_v2 }
   0x7   :  { %102 = vmatpush.msra.mxu0 %v36_v2  ;;  %213 = vmatpush.msra.mxu1 %v36_v2 }
   0x8   :  { %217 = vmatpush.msra.mxu2 %v35_v3  ;;  %218 = vmatpush.msra.mxu3 %v35_v3 }
   0x9   :  { %8 = vsyncpa [#allocation3], 0  ;;  %v33_v5 = vld [vmem:[%s379_s1 + $0x10] sm:$0xff]  ;;  %103 = vmatpush.msra.mxu0 %v35_v3  ;;  %216 = vmatpush.msra.mxu1 %v35_v3  ;;  %v32_v6 = vld [vmem:[%s379_s1 + $0x8] sm:$0xff]  ;;  %vm43_vm0 = vcmask 523264   ;;  %s179_s8 = sshll.u32 %s381_s3, 4  ;;  %s180_s8 = int_to_ptr.hbm [resolvable:$true] %s179_s8 }
   0xa   :  { %220 = vmatpush.msra.mxu2 %v34_v4  ;;  %221 = vmatpush.msra.mxu3 %v34_v4  ;;  %v31_v7 = vld [vmem:[%s379_s1] sm:$0xff]  ;;  %v24_v12 = vld [vmem:[%s378_s0 + $0x48] sm:$0xff]  ;;  %v25_v16 = vld [vmem:[%s378_s0 + $0x50] sm:$0xff]  ;;  %s262_s9 = smov 128   ;;  %s263_s10 = smov 8  }
   0xb   :  { %104 = vmatpush.msra.mxu0 %v34_v4  ;;  %219 = vmatpush.msra.mxu1 %v34_v4  ;;  %v23_v8 = vld [vmem:[%s378_s0 + $0x40] sm:$0xff]  ;;  %v28_v13 = vld [vmem:[%s378_s0 + $0x68] sm:$0xff]  ;;  %v29_v17 = vld [vmem:[%s378_s0 + $0x70] sm:$0xff] }
   0xc   :  { %223 = vmatpush.msra.mxu2 %v33_v5  ;;  %224 = vmatpush.msra.mxu3 %v33_v5  ;;  %v27_v9 = vld [vmem:[%s378_s0 + $0x60] sm:$0xff]  ;;  %v16_v14 = vld [vmem:[%s378_s0 + $0x8] sm:$0xff]  ;;  %v17_v18 = vld [vmem:[%s378_s0 + $0x10] sm:$0xff] }
   0xd   :  { %105 = vmatpush.msra.mxu0 %v33_v5  ;;  %222 = vmatpush.msra.mxu1 %v33_v5  ;;  %v15_v10 = vld [vmem:[%s378_s0] sm:$0xff]  ;;  %v20_v15 = vld [vmem:[%s378_s0 + $0x28] sm:$0xff]  ;;  %v21_v19 = vld [vmem:[%s378_s0 + $0x30] sm:$0xff] }
   0xe   :  { %226 = vmatpush.msra.mxu2 %v32_v6  ;;  %227 = vmatpush.msra.mxu3 %v32_v6  ;;  %v19_v11 = vld [vmem:[%s378_s0 + $0x20] sm:$0xff]  ;;  %v26_v20 = vld [vmem:[%s378_s0 + $0x58] sm:$0xff] }
   0xf   :  { %106 = vmatpush.msra.mxu0 %v32_v6  ;;  %225 = vmatpush.msra.mxu1 %v32_v6  ;;  %v30_v21 = vld [vmem:[%s378_s0 + $0x78] sm:$0xff]  ;;  %v234_v24 = vld [vmem:[%s380_s2] ss:$0 sm:$0xff] }
  0x10   :  { %229 = vmatpush.msra.mxu2 %v31_v7  ;;  %230 = vmatpush.msra.mxu3 %v31_v7  ;;  %v18_v22 = vld [vmem:[%s378_s0 + $0x18] sm:$0xff] }
  0x11   :  { %199 = vmatmul.msk.f32.vlgmr.msra.gmra.mxu2 %vm43_vm0, %v23_v8  ;;  %203 = vmatmul.msk.f32.vlgmr.msra.gmra.mxu3 %vm43_vm0, %v27_v9  ;;  %v22_v23 = vld [vmem:[%s378_s0 + $0x38] sm:$0xff]  ;;  %s261_s0 = smov [#allocation2]  }
  0x12   :  { %107 = vmatpush.msra.mxu0 %v31_v7  ;;  %228 = vmatpush.msra.mxu1 %v31_v7  ;;  %s177_s2 = sshll.u32 %s261_s0, 4  ;;  %s178_s2 = int_to_ptr.vmem [resolvable:$true] %s177_s2 }
  0x13   :  { %191 = vmatmul.msk.f32.vlgmr.msra.gmra.mxu0 %vm43_vm0, %v15_v10  ;;  %195 = vmatmul.msk.f32.vlgmr.msra.gmra.mxu1 %vm43_vm0, %v19_v11 }
  0x19   :  { %200 = vmatmul.msk.f32.gmra.mxu2 %vm43_vm0, %v24_v12  ;;  %204 = vmatmul.msk.f32.gmra.mxu3 %vm43_vm0, %v28_v13 }
  0x1b   :  { %192 = vmatmul.msk.f32.gmra.mxu0 %vm43_vm0, %v16_v14  ;;  %196 = vmatmul.msk.f32.gmra.mxu1 %vm43_vm0, %v20_v15 }
  0x21   :  { %201 = vmatmul.msk.f32.gmra.mxu2 %vm43_vm0, %v25_v16  ;;  %205 = vmatmul.msk.f32.gmra.mxu3 %vm43_vm0, %v29_v17 }
  0x23   :  { %193 = vmatmul.msk.f32.gmra.mxu0 %vm43_vm0, %v17_v18  ;;  %197 = vmatmul.msk.f32.gmra.mxu1 %vm43_vm0, %v21_v19 }
  0x29   :  { %202 = vmatmul.msk.f32.gmra.mxu2 %vm43_vm0, %v26_v20  ;;  %206 = vmatmul.msk.f32.gmra.mxu3 %vm43_vm0, %v30_v21 }
  0x2b   :  { %194 = vmatmul.msk.f32.gmra.mxu0 %vm43_vm0, %v18_v22  ;;  %198 = vmatmul.msk.f32.gmra.mxu1 %vm43_vm0, %v22_v23 }
  0x90   :  { %v109_v25 = vpop.f32.mrf.mxu0  ;;  %v121_v26 = vpop.f32.mrf.mxu1 }
  0x91   :  { %v110_v27 = vadd.f32 %v234_v24, %v109_v25  ;;  %v122_v28 = vadd.f32 %v234_v24, %v121_v26 }
  0x93   :  { %157 = vst [vmem:[#allocation2] sm:$0xff] %v110_v27 }
  0x94   :  { %161 = vst [vmem:[#allocation2 + $0x20] sm:$0xff] %v122_v28  ;;  %v133_v29 = vpop.f32.mrf.mxu2  ;;  %v145_v30 = vpop.f32.mrf.mxu3 }
  0x95   :  { %v134_v31 = vadd.f32 %v234_v24, %v133_v29  ;;  %v146_v32 = vadd.f32 %v234_v24, %v145_v30 }
  0x97   :  { %165 = vst [vmem:[#allocation2 + $0x40] sm:$0xff] %v134_v31 }
  0x98   :  { %169 = vst [vmem:[#allocation2 + $0x60] sm:$0xff] %v146_v32  ;;  %v112_v33 = vpop.f32.mrf.mxu0  ;;  %v124_v34 = vpop.f32.mrf.mxu1 }
  0x99   :  { %v113_v35 = vadd.f32 %v234_v24, %v112_v33  ;;  %v125_v36 = vadd.f32 %v234_v24, %v124_v34 }
  0x9b   :  { %158 = vst [vmem:[#allocation2 + $0x8] sm:$0xff] %v113_v35 }
  0x9c   :  { %162 = vst [vmem:[#allocation2 + $0x28] sm:$0xff] %v125_v36  ;;  %v136_v37 = vpop.f32.mrf.mxu2  ;;  %v148_v38 = vpop.f32.mrf.mxu3 }
  0x9d   :  { %v137_v39 = vadd.f32 %v234_v24, %v136_v37  ;;  %v149_v40 = vadd.f32 %v234_v24, %v148_v38 }
  0x9f   :  { %166 = vst [vmem:[#allocation2 + $0x48] sm:$0xff] %v137_v39 }
  0xa0   :  { %170 = vst [vmem:[#allocation2 + $0x68] sm:$0xff] %v149_v40  ;;  %v115_v41 = vpop.f32.mrf.mxu0  ;;  %v127_v42 = vpop.f32.mrf.mxu1 }
  0xa1   :  { %v116_v43 = vadd.f32 %v234_v24, %v115_v41  ;;  %v128_v44 = vadd.f32 %v234_v24, %v127_v42 }
  0xa3   :  { %159 = vst [vmem:[#allocation2 + $0x10] sm:$0xff] %v116_v43 }
  0xa4   :  { %163 = vst [vmem:[#allocation2 + $0x30] sm:$0xff] %v128_v44  ;;  %v139_v45 = vpop.f32.mrf.mxu2  ;;  %v151_v46 = vpop.f32.mrf.mxu3 }
  0xa5   :  { %v140_v47 = vadd.f32 %v234_v24, %v139_v45  ;;  %v152_v48 = vadd.f32 %v234_v24, %v151_v46 }
  0xa7   :  { %167 = vst [vmem:[#allocation2 + $0x50] sm:$0xff] %v140_v47 }
  0xa8   :  { %171 = vst [vmem:[#allocation2 + $0x70] sm:$0xff] %v152_v48  ;;  %v118_v49 = vpop.f32.mrf.mxu0  ;;  %v130_v50 = vpop.f32.mrf.mxu1 }
  0xa9   :  { %v119_v51 = vadd.f32 %v234_v24, %v118_v49  ;;  %v131_v52 = vadd.f32 %v234_v24, %v130_v50 }
  0xab   :  { %160 = vst [vmem:[#allocation2 + $0x18] sm:$0xff] %v119_v51 }
  0xac   :  { %164 = vst [vmem:[#allocation2 + $0x38] sm:$0xff] %v131_v52  ;;  %v142_v53 = vpop.f32.mrf.mxu2  ;;  %v154_v54 = vpop.f32.mrf.mxu3 }
  0xad   :  { %v143_v55 = vadd.f32 %v234_v24, %v142_v53  ;;  %v155_v56 = vadd.f32 %v234_v24, %v154_v54 }
  0xaf   :  { %168 = vst [vmem:[#allocation2 + $0x58] sm:$0xff] %v143_v55 }
  0xb0   :  { %172 = vst [vmem:[#allocation2 + $0x78] sm:$0xff] %v155_v56 }
  0xb1   :  { %185 = dma.vmem_to_hbm [thread:$0]  %s178_s2, 2048, %s180_s8, [#allocation3], %s262_s9, %s262_s9, %s263_s10  }
  0xb2   :  { %259 = dma.done.wait [#allocation3], 2048  }
  0xb3   :  { %260 = vsyncadd [#allocation3], 4294965248 }
  0xb4   :  { %190 = vsyncpa [#allocation3], 1 }

</bundles_post_ra>
